<compile_context>
chip_gen: v7x
topology: tpu7x:2x2x1
jax: 0.10.0
libtpu: 0.0.40
codegen_flags: <defaults>
</compile_context>

<pallas_src>
import jax
import jax.numpy as jnp
from jax.experimental import pallas as pl
from jax.experimental.pallas import tpu as pltpu

_NEG_BIG = -1e30  # padded-logit value: exp(-1e30 - m) underflows to exactly 0


def _round_up(x, m):
    return (x + m - 1) // m * m


def _classifier_kernel(x_ref, w1_ref, b1_ref, w2_ref, b2_ref, logp_ref):
    # x arrives in f32 (no wrapper-side cast); cast on the VPU — this kernel is
    # store/overhead-bound, so the cast is hidden under the input DMA.
    x = x_ref[...].astype(w1_ref.dtype)

    # lin1 (MXU, f32 accumulate) + bias + ReLU (f32 elementwise; v5e-safe VPU)
    h = jnp.dot(x, w1_ref[...], preferred_element_type=jnp.float32) + b1_ref[...]
    h = jnp.maximum(h, 0.0)
    # F.dropout with training=False is the identity (eval mode) -> no-op.

    # lin2 over the lane-padded class dim (Cp = round_up(C, 128)); padded
    # columns have w2 == 0 and b2 == -1e30, so they never affect the max or
    # contribute to the logsumexp.
    logits = jnp.dot(h.astype(w2_ref.dtype), w2_ref[...],
                     preferred_element_type=jnp.float32) + b2_ref[...]

    # numerically stable log_softmax along the last dim (all f32)
    m = jnp.max(logits, axis=-1, keepdims=True)
    z = logits - m
    lse = jnp.log(jnp.sum(jnp.exp(z), axis=-1, keepdims=True))
    logp_ref[...] = (z - lse).astype(logp_ref.dtype)


def prepare_classifier_params(w1, b1, w2, b2, *, use_bf16=True):
    """One-time (init-time) parameter prep.

    Weights are stored pre-transposed as [in, out], cast once to the MXU dtype,
    and the class dim of w2/b2 is padded to a lane-dense multiple of 128
    (zero weight columns, -1e30 bias) so log_softmax is unaffected.
    """
    nhid, C = w2.shape
    Cp = _round_up(max(C, 1), 128)
    mxu_dtype = jnp.bfloat16 if use_bf16 else jnp.float32

    w1_c = jnp.asarray(w1, mxu_dtype)
    b1_c = jnp.asarray(b1, jnp.float32).reshape(1, -1)

    w2_p = jnp.zeros((nhid, Cp), mxu_dtype).at[:, :C].set(jnp.asarray(w2, mxu_dtype))
    b2_p = jnp.full((1, Cp), _NEG_BIG, jnp.float32).at[:, :C].set(
        jnp.asarray(b2, jnp.float32).reshape(-1))

    return dict(w1=w1_c, b1=b1_c, w2=w2_p, b2=b2_p, num_classes=C)


def classifier_forward(graph_feature, params, *, block_b=1024):
    """graph_feature: [B, nhid] f32. Returns (log_probs [B, C] f32, graph_feature)."""
    B, nhid = graph_feature.shape
    w1, b1, w2, b2 = params["w1"], params["b1"], params["w2"], params["b2"]
    C = params["num_classes"]
    Cp = w2.shape[1]

    # Whole batch in one tile when it fits (block == full dim is always legal);
    # otherwise 1024-row tiles with a Pallas-masked boundary block — no jnp.pad
    # / output slice on the batch axis.
    TB = B if B <= block_b else block_b
    grid = (pl.cdiv(B, TB),)

    w_itemsize = jnp.dtype(w1.dtype).itemsize
    cost = pl.CostEstimate(
        flops=2 * B * nhid * (nhid + Cp),
        transcendentals=B * Cp,
        bytes_accessed=(B * nhid * 4                              # x in (f32)
                        + (nhid * nhid + nhid * Cp) * w_itemsize  # weights
                        + (nhid + Cp) * 4                         # biases
                        + B * Cp * 4),                            # log-probs out
    )

    # VMEM budget: resident weights/biases + double-buffered x/out tiles,
    # with ~2x headroom (floor 16 MiB, ceiling 64 MiB = v7x physical).
    footprint = 2 * ((nhid * nhid + nhid * Cp) * w_itemsize + (nhid + Cp) * 4
                     + TB * nhid * 4 + TB * Cp * 4)
    vmem_limit = min(max(2 * footprint, 16 * 1024 * 1024), 64 * 1024 * 1024)

    logp = pl.pallas_call(
        _classifier_kernel,
        out_shape=jax.ShapeDtypeStruct((B, Cp), jnp.float32),
        grid=grid,
        in_specs=[
            pl.BlockSpec((TB, nhid), lambda i: (i, 0)),     # x tile (pipelined)
            pl.BlockSpec((nhid, nhid), lambda i: (0, 0)),   # w1 resident
            pl.BlockSpec((1, nhid), lambda i: (0, 0)),      # b1 resident
            pl.BlockSpec((nhid, Cp), lambda i: (0, 0)),     # w2 resident (lane-padded)
            pl.BlockSpec((1, Cp), lambda i: (0, 0)),        # b2 resident
        ],
        out_specs=pl.BlockSpec((TB, Cp), lambda i: (i, 0)),
        compiler_params=pltpu.CompilerParams(
            dimension_semantics=("parallel",),
            vmem_limit_bytes=vmem_limit,
        ),
        cost_estimate=cost,
    )(graph_feature, w1, b1, w2, b2)

    if Cp != C:
        logp = logp[:, :C]
    # graph_feature passthrough: pure wrapper return — no kernel read/write.
    return logp, graph_feature


def _init_linear(key, fan_in, fan_out):
    """Deterministic init mimicking torch.nn.Linear (uniform +/- 1/sqrt(fan_in))."""
    kw, kb = jax.random.split(key)
    bound = 1.0 / jnp.sqrt(float(fan_in))
    # stored pre-transposed: [fan_in, fan_out]
    w = jax.random.uniform(kw, (fan_in, fan_out), jnp.float32, -bound, bound)
    b = jax.random.uniform(kb, (fan_out,), jnp.float32, -bound, bound)
    return w, b


if __name__ == "__main__":
    # Small shapes consistent with the module: 8 graphs, nhid=32, 8 classes.
    B, nhid, num_classes = 8, 32, 8

    key = jax.random.PRNGKey(0)
    k_x, k_l1, k_l2 = jax.random.split(key, 3)

    # graph_feature is what GraphPooling would produce: one row per graph.
    graph_feature = jax.random.normal(k_x, (B, nhid), jnp.float32)
    w1, b1 = _init_linear(k_l1, nhid, nhid)
    w2, b2 = _init_linear(k_l2, nhid, num_classes)

    # One-time parameter prep (cast + lane-pad) — done at init, not per call.
    params = prepare_classifier_params(w1, b1, w2, b2)

    log_probs, feat_out = classifier_forward(graph_feature, params)
    jax.block_until_ready((log_probs, feat_out))
    assert log_probs.shape == (B, num_classes)

    # Reference of the kernel's exact recipe (bf16 MXU inputs, f32 accumulate).
    xb = graph_feature.astype(jnp.bfloat16)
    w1b, w2b = w1.astype(jnp.bfloat16), w2.astype(jnp.bfloat16)
    h_ref = jnp.maximum(
        jnp.dot(xb, w1b, preferred_element_type=jnp.float32) + b1[None, :], 0.0)
    logits_ref = jnp.dot(h_ref.astype(jnp.bfloat16), w2b,
                         preferred_element_type=jnp.float32) + b2[None, :]
    logp_ref = jax.nn.log_softmax(logits_ref, axis=-1)
    assert jnp.allclose(log_probs, logp_ref, atol=1e-3, rtol=1e-3)

    # Looser check against pure-f32 PyTorch semantics (bf16 MXU error budget).
    logp_f32 = jax.nn.log_softmax(
        jnp.maximum(graph_feature @ w1 + b1[None, :], 0.0) @ w2 + b2[None, :],
        axis=-1)
    assert jnp.allclose(log_probs, logp_f32, atol=5e-2, rtol=5e-2)

    # graph_feature passthrough is a zero-copy wrapper return.
    assert feat_out is graph_feature

    print("KERNEL_OK")
</pallas_src>

<mosaic_0001>
module attributes {stable_mosaic.version = 11 : i64} {
  func.func @_classifier_kernel(%arg0: i32, %arg1: memref<8x32xf32, #tpu.memory_space<vmem>>, %arg2: memref<32x32xbf16, #tpu.memory_space<vmem>>, %arg3: memref<1x32xf32, #tpu.memory_space<vmem>>, %arg4: memref<32x128xbf16, #tpu.memory_space<vmem>>, %arg5: memref<1x128xf32, #tpu.memory_space<vmem>>, %arg6: memref<8x128xf32, #tpu.memory_space<vmem>>) attributes {dimension_semantics = [#tpu.dimension_semantics<parallel>], iteration_bounds = array<i64: 1>, scalar_prefetch = 0 : i64, scratch_operands = 0 : i64, tpu.core_type = #tpu.core_type<tc>, window_params = [{transform_indices = @transform_0, window_bounds = array<i64: 8, 32>}, {pipeline_mode = #tpu.pipeline_mode<synchronous>, transform_indices = @transform_1, window_bounds = array<i64: 32, 32>}, {pipeline_mode = #tpu.pipeline_mode<synchronous>, transform_indices = @transform_2, window_bounds = array<i64: 1, 32>}, {pipeline_mode = #tpu.pipeline_mode<synchronous>, transform_indices = @transform_3, window_bounds = array<i64: 32, 128>}, {pipeline_mode = #tpu.pipeline_mode<synchronous>, transform_indices = @transform_4, window_bounds = array<i64: 1, 128>}, {transform_indices = @transform_5, window_bounds = array<i64: 8, 128>}]} {
    %c0 = arith.constant 0 : index
    %c0_0 = arith.constant 0 : index
    %0 = vector.load %arg1[%c0, %c0_0] : memref<8x32xf32, #tpu.memory_space<vmem>>, vector<8x32xf32>
    %1 = arith.truncf %0 : vector<8x32xf32> to vector<8x32xbf16>
    %c0_1 = arith.constant 0 : index
    %c0_2 = arith.constant 0 : index
    %2 = vector.load %arg2[%c0_1, %c0_2] : memref<32x32xbf16, #tpu.memory_space<vmem>>, vector<32x32xbf16>
    %cst = arith.constant dense<0.000000e+00> : vector<8x32xf32>
    %3 = tpu.matmul %1, %2, %cst {dimension_numbers = #tpu.dot_dimension_numbers<[1], [0], [0], [1], [0, 0, 1, 1], [], []>} : vector<8x32xbf16>, vector<32x32xbf16>, vector<8x32xf32> -> vector<8x32xf32>
    %c0_3 = arith.constant 0 : index
    %c0_4 = arith.constant 0 : index
    %4 = vector.load %arg3[%c0_3, %c0_4] : memref<1x32xf32, #tpu.memory_space<vmem>>, vector<1x32xf32>
    %5 = vector.broadcast %4 : vector<1x32xf32> to vector<8x32xf32>
    %6 = arith.addf %3, %5 : vector<8x32xf32>
    %cst_5 = arith.constant 0.000000e+00 : f32
    %7 = vector.broadcast %cst_5 : f32 to vector<8x32xf32>
    %8 = arith.maximumf %6, %7 : vector<8x32xf32>
    %9 = arith.truncf %8 : vector<8x32xf32> to vector<8x32xbf16>
    %c0_6 = arith.constant 0 : index
    %c0_7 = arith.constant 0 : index
    %10 = vector.load %arg4[%c0_6, %c0_7] : memref<32x128xbf16, #tpu.memory_space<vmem>>, vector<32x128xbf16>
    %cst_8 = arith.constant dense<0.000000e+00> : vector<8x128xf32>
    %11 = tpu.matmul %9, %10, %cst_8 {dimension_numbers = #tpu.dot_dimension_numbers<[1], [0], [0], [1], [0, 0, 1, 1], [], []>} : vector<8x32xbf16>, vector<32x128xbf16>, vector<8x128xf32> -> vector<8x128xf32>
    %c0_9 = arith.constant 0 : index
    %c0_10 = arith.constant 0 : index
    %12 = vector.load %arg5[%c0_9, %c0_10] : memref<1x128xf32, #tpu.memory_space<vmem>>, vector<1x128xf32>
    %13 = vector.broadcast %12 : vector<1x128xf32> to vector<8x128xf32>
    %14 = arith.addf %11, %13 : vector<8x128xf32>
    %cst_11 = arith.constant dense<0xFF800000> : vector<8xf32>
    %15 = vector.multi_reduction <maximumf>, %14, %cst_11 [1] : vector<8x128xf32> to vector<8xf32>
    %16 = vector.shape_cast %15 : vector<8xf32> to vector<8x1xf32>
    %17 = vector.broadcast %16 : vector<8x1xf32> to vector<8x128xf32>
    %18 = arith.subf %14, %17 : vector<8x128xf32>
    %19 = math.exp %18 : vector<8x128xf32>
    %cst_12 = arith.constant dense<0.000000e+00> : vector<8xf32>
    %20 = vector.multi_reduction <add>, %19, %cst_12 [1] : vector<8x128xf32> to vector<8xf32>
    %21 = vector.shape_cast %20 : vector<8xf32> to vector<8x1xf32>
    %22 = math.log %21 : vector<8x1xf32>
    %23 = vector.broadcast %22 : vector<8x1xf32> to vector<8x128xf32>
    %24 = arith.subf %18, %23 : vector<8x128xf32>
    %c0_13 = arith.constant 0 : index
    %c0_14 = arith.constant 0 : index
    %25 = vector.load %arg6[%c0_13, %c0_14] : memref<8x128xf32, #tpu.memory_space<vmem>>, vector<8x128xf32>
    tpu.vector_store %arg6[%c0_13, %c0_14], %24 {strides = array<i32>} : memref<8x128xf32, #tpu.memory_space<vmem>>, vector<8x128xf32>,
    return
  }
  func.func @transform_0(%arg0: i32) -> (i32, i32) {
    %c0_i32 = arith.constant 0 : i32
    %c0_i32_0 = arith.constant 0 : i32
    return %arg0, %c0_i32 : i32, i32
  }
  func.func @transform_1(%arg0: i32) -> (i32, i32) {
    %c0_i32 = arith.constant 0 : i32
    %c0_i32_0 = arith.constant 0 : i32
    %c0_i32_1 = arith.constant 0 : i32
    return %c0_i32, %c0_i32_0 : i32, i32
  }
  func.func @transform_2(%arg0: i32) -> (i32, i32) {
    %c0_i32 = arith.constant 0 : i32
    %c0_i32_0 = arith.constant 0 : i32
    %c0_i32_1 = arith.constant 0 : i32
    return %c0_i32, %c0_i32_0 : i32, i32
  }
  func.func @transform_3(%arg0: i32) -> (i32, i32) {
    %c0_i32 = arith.constant 0 : i32
    %c0_i32_0 = arith.constant 0 : i32
    %c0_i32_1 = arith.constant 0 : i32
    return %c0_i32, %c0_i32_0 : i32, i32
  }
  func.func @transform_4(%arg0: i32) -> (i32, i32) {
    %c0_i32 = arith.constant 0 : i32
    %c0_i32_0 = arith.constant 0 : i32
    %c0_i32_1 = arith.constant 0 : i32
    return %c0_i32, %c0_i32_0 : i32, i32
  }
  func.func @transform_5(%arg0: i32) -> (i32, i32) {
    %c0_i32 = arith.constant 0 : i32
    %c0_i32_0 = arith.constant 0 : i32
    return %arg0, %c0_i32 : i32, i32
  }
}

</mosaic_0001>

<bundles_post_ra>
// kernel: tpu_custom_call.1
= control target key start
LH: loop header
LB: loop body
LE: loop exit
PB: predicated region body
PF: predicated region fallthrough
CT: control target
= control target key end

     0   :  { %10 = vsyncpa [#allocation3], 0  ;;  %s463_s0 = inlined_call_operand.hbm [shape: f32[8,32], index: 0, kind: input, shape index: {}]   ;;  %s464_s1 = inlined_call_operand.hbm [shape: bf16[32,32], index: 1, kind: input, shape index: {}]   ;;  %s465_s2 = inlined_call_operand.vmem [shape: f32[1,32], index: 2, kind: input, shape index: {}]   ;;  %s466_s3 = inlined_call_operand.hbm [shape: bf16[32,128], index: 3, kind: input, shape index: {}]   ;;  %s467_s4 = inlined_call_operand.vmem [shape: f32[1,128], index: 4, kind: input, shape index: {}]   ;;  %s468_s5 = inlined_call_operand.hbm [shape: f32[8,128], index: 5, kind: output, shape index: {}]  }
   0x1   :  { %11 = vsyncpa [#allocation6], 0 }
   0x2   :  { %12 = vsyncpa [#allocation4], 0  ;;  %s365_s18 = smov [#allocation5]   ;;  %s271_s22 = scalar_lea.hbm %s464_s1, 256 }
   0x3   :  { %s28_s19 = sshll.u32 %s365_s18, 4  ;;  %p272_p0 = scmp.ne.s32.totalorder %s464_s1, %s271_s22  ;;  %s29_s19 = int_to_ptr.vmem [resolvable:$true] %s28_s19 }
   0x4   :  { %p275_p1 = scmp.lt.u32.totalorder %s271_s22, %s464_s1 }
   0x6   :  { %p277_p2 = pnand %p275_p1, %p272_p0 }
   0x8   :  { %280 = shalt.err (!%p277_p2)
}
   0x9   :  { %s281_s27 = scalar_lea.vmem %s29_s19, 256  ;;  %p286_p4 = scmp.lt.s32.totalorder %s29_s19, %s29_s19 }
   0xa   :  { %p282_p3 = scmp.ne.s32.totalorder %s29_s19, %s281_s27  ;;  %p287_p5 = scmp.lt.s32.totalorder %s281_s27, %s281_s27 }
   0xc   :  { %p288_p6 = por %p287_p5, %p286_p4 }
   0xe   :  { %p289_p7 = pnand %p288_p6, %p282_p3 }
  0x10   :  { %292 = shalt.err (!%p289_p7)
}
  0x11   :  { %s366_s28 = smov 64   ;;  %s367_s29 = smov 4  }
  0x12   :  { %34 = dma.hbm_to_vmem [thread:$0]  %s464_s1, 256, %s29_s19, [#allocation6], %s366_s28, %s366_s28, %s367_s29  }
  0x13   :  { %s368_s7 = smov [#allocation2]   ;;  %s369_s9 = smov [#allocation7]  }
  0x14   :  { %s19_s8 = sshll.u32 %s368_s7, 4  ;;  %s42_s10 = sshll.u32 %s369_s9, 4  ;;  %s20_s8 = int_to_ptr.vmem [resolvable:$true] %s19_s8  ;;  %s43_s10 = int_to_ptr.vmem [resolvable:$true] %s42_s10 }
  0x15   :  { %s293_s13 = scalar_lea.hbm %s463_s0, 128 }
  0x16   :  { %p294_p8 = scmp.ne.s32.totalorder %s463_s0, %s293_s13  ;;  %p297_p9 = scmp.lt.u32.totalorder %s293_s13, %s463_s0 }
  0x18   :  { %p299_p10 = pnand %p297_p9, %p294_p8 }
  0x1a   :  { %302 = shalt.err (!%p299_p10)
}
  0x1b   :  { %s303_s1 = scalar_lea.vmem %s20_s8, 128  ;;  %p308_p12 = scmp.lt.s32.totalorder %s20_s8, %s20_s8 }
  0x1c   :  { %p304_p11 = scmp.ne.s32.totalorder %s20_s8, %s303_s1  ;;  %p309_p13 = scmp.lt.s32.totalorder %s303_s1, %s303_s1 }
  0x1e   :  { %p310_p0 = por %p309_p13, %p308_p12 }
  0x20   :  { %p311_p1 = pnand %p310_p0, %p304_p11 }
  0x22   :  { %314 = shalt.err (!%p311_p1)
}
  0x23   :  { %22 = dma.hbm_to_vmem [thread:$0]  %s463_s0, 128, %s20_s8, [#allocation3]  }
  0x24   :  { %s315_s22 = scalar_lea.hbm %s466_s3, 256 }
  0x25   :  { %p316_p2 = scmp.ne.s32.totalorder %s466_s3, %s315_s22  ;;  %p319_p3 = scmp.lt.u32.totalorder %s315_s22, %s466_s3 }
  0x27   :  { %p321_p4 = pnand %p319_p3, %p316_p2 }
  0x29   :  { %324 = shalt.err (!%p321_p4)
}
  0x2a   :  { %s325_s27 = scalar_lea.vmem %s43_s10, 256  ;;  %p330_p6 = scmp.lt.s32.totalorder %s43_s10, %s43_s10 }
  0x2b   :  { %p326_p5 = scmp.ne.s32.totalorder %s43_s10, %s325_s27  ;;  %p331_p7 = scmp.lt.s32.totalorder %s325_s27, %s325_s27 }
  0x2d   :  { %p332_p8 = por %p331_p7, %p330_p6 }
  0x2f   :  { %p333_p9 = pnand %p332_p8, %p326_p5 }
  0x31   :  { %336 = shalt.err (!%p333_p9)
}
  0x32   :  { %48 = dma.hbm_to_vmem [thread:$0]  %s466_s3, 256, %s43_s10, [#allocation6], %s366_s28, %s366_s28, %s367_s29  }
  0x33   :  { %359 = dma.done.wait [#allocation3], 128  }
  0x34   :  { %360 = vsyncadd [#allocation3], 4294967168 }
  0x35   :  { %361 = dma.done.wait [#allocation6], 512  }
  0x36   :  { %362 = vsyncadd [#allocation6], 4294966784  ;;  %v370_v0 = vmov 0.0   ;;  %vm371_vm0 = vmmov 0   ;;  %v263_v1 = vld [vmem:[#allocation5] sm:$0xff]   ;;  %v264_v2 = vld [vmem:[#allocation5 + $0x8] sm:$0xff]  }
  0x37   :  { %239 = vmatprep.subr.bf16.mxu0 %v370_v0  ;;  %243 = vmatprep.mubr.msk.bf16.mxu0 %vm371_vm0, %v370_v0  ;;  %v61_v3 = vld [vmem:[#allocation2] sm:$0xff]  ;;  %vm86_vm1 = vcmask 261120   ;;  %v265_v5 = vld [vmem:[#allocation7] sm:$0xff]  }
  0x38   :  { %247 = vmatprep.subr.bf16.mxu1 %v370_v0  ;;  %251 = vmatprep.mubr.msk.bf16.mxu1 %vm371_vm0, %v370_v0  ;;  %v62_v4 = vpack.c.bf16 %v61_v3, %v61_v3  ;;  %v266_v6 = vld [vmem:[#allocation7 + $0x8] sm:$0xff]  }
  0x39   :  { %240 = vmatpush3.bf16.msra.mxu0 %v263_v1  ;;  %248 = vmatpush3.bf16.msra.mxu1 %v265_v5  ;;  %v225_v7 = vld [vmem:[%s465_s2] ss:$0 sm:$0xff]  ;;  %s372_s2 = smov [#allocation8]  }
  0x3a   :  { %241 = vmatprep.subr.bf16.mxu0 %v370_v0  ;;  %249 = vmatprep.subr.bf16.mxu1 %v370_v0  ;;  %v229_v15 = vld [vmem:[%s467_s4] ss:$0 sm:$0xff]  ;;  %s215_s7 = sshll.u32 %s372_s2, 4  ;;  %s216_s7 = int_to_ptr.vmem [resolvable:$true] %s215_s7 }
  0x3b   :  { %s337_s4 = scalar_lea.vmem %s216_s7, 128  ;;  %p342_p11 = scmp.lt.s32.totalorder %s216_s7, %s216_s7 }
  0x3c   :  { %p338_p10 = scmp.ne.s32.totalorder %s216_s7, %s337_s4  ;;  %p343_p12 = scmp.lt.s32.totalorder %s337_s4, %s337_s4 }
  0x3d   :  { %242 = vmatpush3.bf16.msra.mxu0 %v264_v2  ;;  %250 = vmatpush3.bf16.msra.mxu1 %v266_v6 }
  0x3e   :  { %p344_p13 = por %p343_p12, %p342_p11 }
  0x40   :  { %244 = vmatmul.mubr.msk.bf16.vlgmr.msra.gmra.mrb[0].mxu0 %vm86_vm1, %v62_v4  ;;  %p345_p0 = pnand %p344_p13, %p338_p10 }
 0x113   :  { %v124_v8 = vpop.f32.mrb[0].mxu0 }
 0x114   :  { %v125_v9 = vadd.f32 %v225_v7, %v124_v8  ;;  %v245_v10 = vpop.f32.mrb[1].mxu0 }
 0x115   :  { %v127_v11 = vpop.f32.mrb[2].mxu0 }
 0x116   :  { %v130_v12 = vmax.f32 %v125_v9, 0.0  ;;  %v246_v13 = vpop.f32.mrb[3].mxu0 }
 0x118   :  { %v131_v14 = vpack.c.bf16 %v130_v12, %v130_v12 }
 0x11a   :  { %252 = vmatmul.mubr.msk.bf16.vlgmr.msra.gmra.mrb[0].mxu1 %vm86_vm1, %v131_v14 }
 0x1ed   :  { %v192_v16 = vpop.f32.mrb[0].mxu1 }
 0x1ee   :  { %v193_v17 = vadd.f32 %v229_v15, %v192_v16  ;;  %v253_v18 = vpop.f32.mrb[1].mxu1 }
 0x1ef   :  { %v195_v19 = vpop.f32.mrb[2].mxu1 }
 0x1f0   :  { %198 = vmax.xlane.f32.xlu0 %v193_v17  ;;  %v254_v20 = vpop.f32.mrb[3].mxu1 }
 0x27d   :  { %v199_v21 = vpop.xlane.xlu0 %198 }
 0x27e   :  { %v200_v22 = vsub.f32 %v193_v17, %v199_v21 }
 0x280   :  { %v201_v23 = vmul.f32 1.442695, %v200_v22 }
 0x282   :  { %267 = vpow2.f32 %v201_v23 }
 0x28c   :  { %v268_v24 = vpop.eup %267 }
 0x28d   :  { %203 = vadd.xlane.f32.xlu0 %v268_v24 }
 0x31a   :  { %v204_v25 = vpop.xlane.xlu0 %203 }
 0x31b   :  { %269 = vlog2.f32 %v204_v25 }
 0x325   :  { %v270_v26 = vpop.eup %269 }
 0x326   :  { %v206_v27 = vmul.f32 0.6931472, %v270_v26 }
 0x328   :  { %v207_v28 = vsub.f32 %v200_v22, %v206_v27 }
 0x32a   :  { %208 = vst [vmem:[#allocation8] sm:$0xff] %v207_v28 }
 0x32b   :  { %348 = shalt.err (!%p345_p0)
}
 0x32c   :  { %s349_s10 = scalar_lea.hbm %s468_s5, 128 }
 0x32d   :  { %p350_p1 = scmp.ne.s32.totalorder %s468_s5, %s349_s10  ;;  %p353_p2 = scmp.lt.u32.totalorder %s349_s10, %s468_s5 }
 0x32f   :  { %p355_p3 = pnand %p353_p2, %p350_p1 }
 0x331   :  { %358 = shalt.err (!%p355_p3)
}
 0x332   :  { %218 = dma.vmem_to_hbm [thread:$0]  %s216_s7, 128, %s468_s5, [#allocation4]  }
 0x333   :  { %363 = dma.done.wait [#allocation4], 128  }
 0x334   :  { %364 = vsyncadd [#allocation4], 4294967168 }
 0x335   :  { %222 = vsyncpa [#allocation3], 1 }
 0x336   :  { %223 = vsyncpa [#allocation6], 1 }
 0x337   :  { %224 = vsyncpa [#allocation4], 1 }

</bundles_post_ra>
